<compile_context>
chip_gen: v5e
topology: v5e:2x2
jax: 0.10.0
libtpu: 0.0.40
codegen_flags: <defaults>
</compile_context>

<pallas_src>
import functools

import jax
import jax.numpy as jnp
from jax.experimental import pallas as pl
from jax.experimental.pallas import tpu as pltpu


def gcn_attention_kernel(adj_ref, x_ref,
                         w1_ref, b1_ref,
                         wq_ref, bq_ref,
                         wk_ref, bk_ref,
                         wv_ref, bv_ref,
                         w2_ref, b2_ref,
                         out_ref):
    f32 = jnp.float32
    bf16 = jnp.bfloat16

    adj_b = adj_ref[0]                 # (N, N) bf16, exact 0/1 values
    x = x_ref[0]                       # (N, F) f32

    # ---- gcn1: relu(adj @ (x @ W1) + b1); both GEMMs bf16 on MXU, f32 acc ----
    h0 = jnp.dot(x.astype(bf16), w1_ref[...], preferred_element_type=f32)
    h = jnp.dot(adj_b, h0.astype(bf16), preferred_element_type=f32) + b1_ref[...]
    h = jnp.maximum(h, 0.0)
    h_b = h.astype(bf16)

    # ---- Q/K/V: three separate dots (no intra-tile lane slicing) -------------
    q = jnp.dot(h_b, wq_ref[...], preferred_element_type=f32) + bq_ref[...]
    k = jnp.dot(h_b, wk_ref[...], preferred_element_type=f32) + bk_ref[...]
    v = jnp.dot(h_b, wv_ref[...], preferred_element_type=f32) + bv_ref[...]

    # ---- scores = Q @ K^T (contract last axes -> MXU trans_b path) -----------
    scores = jax.lax.dot_general(q.astype(bf16), k.astype(bf16),
                                 (((1,), (1,)), ((), ())),
                                 preferred_element_type=f32)

    # ---- A_tilde = adj * scores ; row softmax (numerator kept un-normalized) -
    a_tilde = scores * adj_b.astype(f32)
    m = jnp.max(a_tilde, axis=1, keepdims=True)
    e = jnp.exp(a_tilde - m)                              # f32 exp (v5e-safe)
    inv_l = pl.reciprocal(jnp.sum(e, axis=1, keepdims=True), approx=True)

    # ---- gcn_norm collapse: softmax rows sum to 1 => deg == 2 per row, so
    #      D^-1/2 (attn + I) D^-1/2 == 0.5*(attn + I).  X_tilde = relu(attn@V + V)
    #      with the 0.5 pre-folded into W2 (relu(0.5*y) = 0.5*relu(y)); the
    #      (N,1) softmax scale lands on the small (N,nhid) product.
    ev = jnp.dot(e.astype(bf16), v.astype(bf16), preferred_element_type=f32)
    xt = jnp.maximum(ev * inv_l + v, 0.0)

    # ---- gcn2: adj @ (X_tilde @ W2) + b2 ; W2 pre-scaled by 0.5 and padded to
    #      128 output lanes (zeros), b2 padded with -1e30 so the pad classes
    #      vanish under the final softmax (full-lane stores, no lane slicing).
    z0 = jnp.dot(xt.astype(bf16), w2_ref[...], preferred_element_type=f32)
    z = jnp.dot(adj_b, z0.astype(bf16), preferred_element_type=f32) + b2_ref[...]

    # ---- final softmax over classes (exact divide for output parity) ---------
    zm = jnp.max(z, axis=1, keepdims=True)
    ze = jnp.exp(z - zm)
    out_ref[0, :, :] = ze / jnp.sum(ze, axis=1, keepdims=True)


@functools.partial(jax.jit, static_argnames=("nclass",))
def gcn_attention_forward_batched(adj_bf16, x, prep, *, nclass):
    """adj_bf16: (B,N,N) bf16 0/1 adjacency, x: (B,N,F) f32, prep: prepare_params()."""
    B, N, _ = adj_bf16.shape
    weights = prep
    nclass_p = weights[-1].shape[1]

    graph_spec = lambda shape: pl.BlockSpec((1,) + tuple(shape[1:]),
                                            lambda b: (b, 0, 0))
    weight_spec = lambda arr: pl.BlockSpec(arr.shape, lambda b: (0, 0))

    # Whole-graph-in-VMEM sizing hint (defaults are only 16/32 MiB scoped).
    vmem_bytes = int(min(64 * 1024 * 1024,
                         max(8 * 1024 * 1024,
                             32 * N * N + 64 * N * (nclass_p + 64) + (2 << 20))))

    out_p = pl.pallas_call(
        gcn_attention_kernel,
        out_shape=jax.ShapeDtypeStruct((B, N, nclass_p), jnp.float32),
        grid=(B,),
        in_specs=[graph_spec(adj_bf16.shape), graph_spec(x.shape)]
                 + [weight_spec(w) for w in weights],
        out_specs=pl.BlockSpec((1, N, nclass_p), lambda b: (b, 0, 0)),
        compiler_params=pltpu.CompilerParams(
            dimension_semantics=("parallel",),
            vmem_limit_bytes=vmem_bytes),
    )(adj_bf16, x, *weights)

    return out_p[:, :, :nclass]


def gcn_attention_forward(adj_bf16, x, prep, *, nclass):
    """Single-graph convenience wrapper (adj: (N,N), x: (N,F))."""
    return gcn_attention_forward_batched(adj_bf16[None], x[None], prep,
                                         nclass=nclass)[0]


def make_params(key, nfeat, nhid, nclass):
    ks = jax.random.split(key, 10)
    s = 0.1

    def lin(kw, kb, din, dout):
        # stored already transposed so the kernel computes x @ W + b
        w = jax.random.normal(kw, (din, dout), jnp.float32) * s
        b = jax.random.normal(kb, (1, dout), jnp.float32) * s
        return w, b

    w1, b1 = lin(ks[0], ks[1], nfeat, nhid)   # gcn1
    wq, bq = lin(ks[2], ks[3], nhid, nhid)    # Q
    wk, bk = lin(ks[4], ks[5], nhid, nhid)    # K
    wv, bv = lin(ks[6], ks[7], nhid, nhid)    # V
    w2, b2 = lin(ks[8], ks[9], nhid, nclass)  # gcn2
    return (w1, b1, wq, bq, wk, bk, wv, bv, w2, b2)


def prepare_params(params, nclass):
    """One-time host-side prep, hoisted out of the per-call hot path:
    bf16 weight casts, 0.5 gcn_norm constant folded into W2, gcn2 output padded
    to a 128-lane boundary (zero weights, -1e30 bias on the padded classes)."""
    (w1, b1, wq, bq, wk, bk, wv, bv, w2, b2) = params
    bf16 = jnp.bfloat16
    nclass_p = ((nclass + 127) // 128) * 128
    w2p = jnp.zeros((w2.shape[0], nclass_p), jnp.float32).at[:, :nclass].set(0.5 * w2)
    b2p = jnp.full((1, nclass_p), -1e30, jnp.float32).at[:, :nclass].set(b2)
    return (w1.astype(bf16), b1,
            wq.astype(bf16), bq,
            wk.astype(bf16), bk,
            wv.astype(bf16), bv,
            w2p.astype(bf16), b2p)


def gcn_attention_reference(adj, x, params):
    """Pure-JAX f32 reference mirroring the PyTorch forward."""
    # TODO(synk): gcn_norm is not shown in model_HAN.py; the standard Kipf
    # D^-1/2 (A + I) D^-1/2 normalization is assumed here (as in the kernel).
    (w1, b1, wq, bq, wk, bk, wv, bv, w2, b2) = params
    h = jax.nn.relu(adj @ (x @ w1) + b1)
    q = h @ wq + bq
    k = h @ wk + bk
    v = h @ wv + bv
    a_tilde = adj * (q @ k.T)
    attention = jax.nn.softmax(a_tilde, axis=1)
    a_hat = attention + jnp.eye(adj.shape[0], dtype=attention.dtype)
    d_inv_sqrt = 1.0 / jnp.sqrt(jnp.sum(a_hat, axis=1))
    xt = jax.nn.relu((d_inv_sqrt[:, None] * a_hat * d_inv_sqrt[None, :]) @ v)
    z = adj @ (xt @ w2) + b2
    return jax.nn.softmax(z, axis=1)


if __name__ == "__main__":
    B, N, nfeat, nhid, nclass = 2, 64, 16, 32, 8

    key = jax.random.PRNGKey(0)
    k_adj, k_x, k_p = jax.random.split(key, 3)

    # symmetric "dense sparse" 0/1 adjacency with self-loops, per graph
    a_rand = jax.random.uniform(k_adj, (B, N, N), jnp.float32)
    adj = ((a_rand + jnp.swapaxes(a_rand, 1, 2)) * 0.5 > 0.85).astype(jnp.float32)
    adj = jnp.maximum(adj, jnp.eye(N, dtype=jnp.float32)[None])

    x = jax.random.normal(k_x, (B, N, nfeat), jnp.float32)

    params = make_params(k_p, nfeat, nhid, nclass)
    prep = prepare_params(params, nclass)          # hoisted host-side prep
    adj_bf16 = adj.astype(jnp.bfloat16)            # persistent bf16 adj (exact 0/1)

    out = gcn_attention_forward_batched(adj_bf16, x, prep, nclass=nclass)
    out = jax.block_until_ready(out)
    assert out.shape == (B, N, nclass)
    assert bool(jnp.all(jnp.isfinite(out)))
    # rows of the final softmax must sum to ~1 (exact divide in the kernel)
    assert bool(jnp.all(jnp.abs(jnp.sum(out, axis=-1) - 1.0) < 1e-3))

    # sanity-check against the pure-JAX f32 reference (bf16 MXU operands => loose tol)
    ref = jax.vmap(lambda a, xx: gcn_attention_reference(a, xx, params))(adj, x)
    max_err = float(jnp.max(jnp.abs(out - ref)))
    assert max_err < 5e-2, max_err

    print("KERNEL_OK")
</pallas_src>

<mosaic_0001>
module attributes {stable_mosaic.version = 11 : i64} {
  func.func @gcn_attention_kernel(%arg0: i32, %arg1: memref<1x64x64xbf16, #tpu.memory_space<vmem>>, %arg2: memref<1x64x16xf32, #tpu.memory_space<vmem>>, %arg3: memref<16x32xbf16, #tpu.memory_space<vmem>>, %arg4: memref<1x32xf32, #tpu.memory_space<vmem>>, %arg5: memref<32x32xbf16, #tpu.memory_space<vmem>>, %arg6: memref<1x32xf32, #tpu.memory_space<vmem>>, %arg7: memref<32x32xbf16, #tpu.memory_space<vmem>>, %arg8: memref<1x32xf32, #tpu.memory_space<vmem>>, %arg9: memref<32x32xbf16, #tpu.memory_space<vmem>>, %arg10: memref<1x32xf32, #tpu.memory_space<vmem>>, %arg11: memref<32x128xbf16, #tpu.memory_space<vmem>>, %arg12: memref<1x128xf32, #tpu.memory_space<vmem>>, %arg13: memref<1x64x128xf32, #tpu.memory_space<vmem>>) attributes {dimension_semantics = [#tpu.dimension_semantics<parallel>], iteration_bounds = array<i64: 2>, scalar_prefetch = 0 : i64, scratch_operands = 0 : i64, tpu.core_type = #tpu.core_type<tc>, window_params = [{transform_indices = @transform_0, window_bounds = array<i64: 1, 64, 64>}, {transform_indices = @transform_1, window_bounds = array<i64: 1, 64, 16>}, {pipeline_mode = #tpu.pipeline_mode<synchronous>, transform_indices = @transform_2, window_bounds = array<i64: 16, 32>}, {pipeline_mode = #tpu.pipeline_mode<synchronous>, transform_indices = @transform_3, window_bounds = array<i64: 1, 32>}, {pipeline_mode = #tpu.pipeline_mode<synchronous>, transform_indices = @transform_4, window_bounds = array<i64: 32, 32>}, {pipeline_mode = #tpu.pipeline_mode<synchronous>, transform_indices = @transform_5, window_bounds = array<i64: 1, 32>}, {pipeline_mode = #tpu.pipeline_mode<synchronous>, transform_indices = @transform_6, window_bounds = array<i64: 32, 32>}, {pipeline_mode = #tpu.pipeline_mode<synchronous>, transform_indices = @transform_7, window_bounds = array<i64: 1, 32>}, {pipeline_mode = #tpu.pipeline_mode<synchronous>, transform_indices = @transform_8, window_bounds = array<i64: 32, 32>}, {pipeline_mode = #tpu.pipeline_mode<synchronous>, transform_indices = @transform_9, window_bounds = array<i64: 1, 32>}, {pipeline_mode = #tpu.pipeline_mode<synchronous>, transform_indices = @transform_10, window_bounds = array<i64: 32, 128>}, {pipeline_mode = #tpu.pipeline_mode<synchronous>, transform_indices = @transform_11, window_bounds = array<i64: 1, 128>}, {transform_indices = @transform_12, window_bounds = array<i64: 1, 64, 128>}]} {
    %c0 = arith.constant 0 : index
    %c0_0 = arith.constant 0 : index
    %c0_1 = arith.constant 0 : index
    %0 = vector.load %arg1[%c0, %c0_0, %c0_1] : memref<1x64x64xbf16, #tpu.memory_space<vmem>>, vector<1x64x64xbf16>
    %1 = vector.shape_cast %0 : vector<1x64x64xbf16> to vector<64x64xbf16>
    %c0_2 = arith.constant 0 : index
    %c0_3 = arith.constant 0 : index
    %c0_4 = arith.constant 0 : index
    %2 = vector.load %arg2[%c0_2, %c0_3, %c0_4] : memref<1x64x16xf32, #tpu.memory_space<vmem>>, vector<1x64x16xf32>
    %3 = vector.shape_cast %2 : vector<1x64x16xf32> to vector<64x16xf32>
    %4 = arith.truncf %3 : vector<64x16xf32> to vector<64x16xbf16>
    %c0_5 = arith.constant 0 : index
    %c0_6 = arith.constant 0 : index
    %5 = vector.load %arg3[%c0_5, %c0_6] : memref<16x32xbf16, #tpu.memory_space<vmem>>, vector<16x32xbf16>
    %cst = arith.constant dense<0.000000e+00> : vector<64x32xf32>
    %6 = tpu.matmul %4, %5, %cst {dimension_numbers = #tpu.dot_dimension_numbers<[1], [0], [0], [1], [0, 0, 1, 1], [], []>} : vector<64x16xbf16>, vector<16x32xbf16>, vector<64x32xf32> -> vector<64x32xf32>
    %7 = arith.truncf %6 : vector<64x32xf32> to vector<64x32xbf16>
    %cst_7 = arith.constant dense<0.000000e+00> : vector<64x32xf32>
    %8 = tpu.matmul %1, %7, %cst_7 {dimension_numbers = #tpu.dot_dimension_numbers<[1], [0], [0], [1], [0, 0, 1, 1], [], []>} : vector<64x64xbf16>, vector<64x32xbf16>, vector<64x32xf32> -> vector<64x32xf32>
    %c0_8 = arith.constant 0 : index
    %c0_9 = arith.constant 0 : index
    %9 = vector.load %arg4[%c0_8, %c0_9] : memref<1x32xf32, #tpu.memory_space<vmem>>, vector<1x32xf32>
    %10 = vector.broadcast %9 : vector<1x32xf32> to vector<64x32xf32>
    %11 = arith.addf %8, %10 : vector<64x32xf32>
    %cst_10 = arith.constant 0.000000e+00 : f32
    %12 = vector.broadcast %cst_10 : f32 to vector<64x32xf32>
    %13 = arith.maximumf %11, %12 : vector<64x32xf32>
    %14 = arith.truncf %13 : vector<64x32xf32> to vector<64x32xbf16>
    %c0_11 = arith.constant 0 : index
    %c0_12 = arith.constant 0 : index
    %15 = vector.load %arg5[%c0_11, %c0_12] : memref<32x32xbf16, #tpu.memory_space<vmem>>, vector<32x32xbf16>
    %cst_13 = arith.constant dense<0.000000e+00> : vector<64x32xf32>
    %16 = tpu.matmul %14, %15, %cst_13 {dimension_numbers = #tpu.dot_dimension_numbers<[1], [0], [0], [1], [0, 0, 1, 1], [], []>} : vector<64x32xbf16>, vector<32x32xbf16>, vector<64x32xf32> -> vector<64x32xf32>
    %c0_14 = arith.constant 0 : index
    %c0_15 = arith.constant 0 : index
    %17 = vector.load %arg6[%c0_14, %c0_15] : memref<1x32xf32, #tpu.memory_space<vmem>>, vector<1x32xf32>
    %18 = vector.broadcast %17 : vector<1x32xf32> to vector<64x32xf32>
    %19 = arith.addf %16, %18 : vector<64x32xf32>
    %c0_16 = arith.constant 0 : index
    %c0_17 = arith.constant 0 : index
    %20 = vector.load %arg7[%c0_16, %c0_17] : memref<32x32xbf16, #tpu.memory_space<vmem>>, vector<32x32xbf16>
    %cst_18 = arith.constant dense<0.000000e+00> : vector<64x32xf32>
    %21 = tpu.matmul %14, %20, %cst_18 {dimension_numbers = #tpu.dot_dimension_numbers<[1], [0], [0], [1], [0, 0, 1, 1], [], []>} : vector<64x32xbf16>, vector<32x32xbf16>, vector<64x32xf32> -> vector<64x32xf32>
    %c0_19 = arith.constant 0 : index
    %c0_20 = arith.constant 0 : index
    %22 = vector.load %arg8[%c0_19, %c0_20] : memref<1x32xf32, #tpu.memory_space<vmem>>, vector<1x32xf32>
    %23 = vector.broadcast %22 : vector<1x32xf32> to vector<64x32xf32>
    %24 = arith.addf %21, %23 : vector<64x32xf32>
    %c0_21 = arith.constant 0 : index
    %c0_22 = arith.constant 0 : index
    %25 = vector.load %arg9[%c0_21, %c0_22] : memref<32x32xbf16, #tpu.memory_space<vmem>>, vector<32x32xbf16>
    %cst_23 = arith.constant dense<0.000000e+00> : vector<64x32xf32>
    %26 = tpu.matmul %14, %25, %cst_23 {dimension_numbers = #tpu.dot_dimension_numbers<[1], [0], [0], [1], [0, 0, 1, 1], [], []>} : vector<64x32xbf16>, vector<32x32xbf16>, vector<64x32xf32> -> vector<64x32xf32>
    %c0_24 = arith.constant 0 : index
    %c0_25 = arith.constant 0 : index
    %27 = vector.load %arg10[%c0_24, %c0_25] : memref<1x32xf32, #tpu.memory_space<vmem>>, vector<1x32xf32>
    %28 = vector.broadcast %27 : vector<1x32xf32> to vector<64x32xf32>
    %29 = arith.addf %26, %28 : vector<64x32xf32>
    %30 = arith.truncf %19 : vector<64x32xf32> to vector<64x32xbf16>
    %31 = arith.truncf %24 : vector<64x32xf32> to vector<64x32xbf16>
    %cst_26 = arith.constant dense<0.000000e+00> : vector<64x64xf32>
    %32 = tpu.matmul %30, %31, %cst_26 {dimension_numbers = #tpu.dot_dimension_numbers<[1], [1], [0], [0], [0, 0, 1, 0], [], []>} : vector<64x32xbf16>, vector<64x32xbf16>, vector<64x64xf32> -> vector<64x64xf32>
    %33 = arith.extf %1 : vector<64x64xbf16> to vector<64x64xf32>
    %34 = arith.mulf %32, %33 : vector<64x64xf32>
    %cst_27 = arith.constant dense<0xFF800000> : vector<64xf32>
    %35 = vector.multi_reduction <maximumf>, %34, %cst_27 [1] : vector<64x64xf32> to vector<64xf32>
    %36 = vector.shape_cast %35 : vector<64xf32> to vector<64x1xf32>
    %37 = vector.broadcast %36 : vector<64x1xf32> to vector<64x64xf32>
    %38 = arith.subf %34, %37 : vector<64x64xf32>
    %39 = math.exp %38 : vector<64x64xf32>
    %cst_28 = arith.constant dense<0.000000e+00> : vector<64xf32>
    %40 = vector.multi_reduction <add>, %39, %cst_28 [1] : vector<64x64xf32> to vector<64xf32>
    %41 = vector.shape_cast %40 : vector<64xf32> to vector<64x1xf32>
    %42 = tpu.reciprocal %41 {approx = true} : vector<64x1xf32> -> vector<64x1xf32>
    %43 = arith.truncf %39 : vector<64x64xf32> to vector<64x64xbf16>
    %44 = arith.truncf %29 : vector<64x32xf32> to vector<64x32xbf16>
    %cst_29 = arith.constant dense<0.000000e+00> : vector<64x32xf32>
    %45 = tpu.matmul %43, %44, %cst_29 {dimension_numbers = #tpu.dot_dimension_numbers<[1], [0], [0], [1], [0, 0, 1, 1], [], []>} : vector<64x64xbf16>, vector<64x32xbf16>, vector<64x32xf32> -> vector<64x32xf32>
    %46 = vector.broadcast %42 : vector<64x1xf32> to vector<64x32xf32>
    %47 = arith.mulf %45, %46 : vector<64x32xf32>
    %48 = arith.addf %47, %29 : vector<64x32xf32>
    %cst_30 = arith.constant 0.000000e+00 : f32
    %49 = vector.broadcast %cst_30 : f32 to vector<64x32xf32>
    %50 = arith.maximumf %48, %49 : vector<64x32xf32>
    %51 = arith.truncf %50 : vector<64x32xf32> to vector<64x32xbf16>
    %c0_31 = arith.constant 0 : index
    %c0_32 = arith.constant 0 : index
    %52 = vector.load %arg11[%c0_31, %c0_32] : memref<32x128xbf16, #tpu.memory_space<vmem>>, vector<32x128xbf16>
    %cst_33 = arith.constant dense<0.000000e+00> : vector<64x128xf32>
    %53 = tpu.matmul %51, %52, %cst_33 {dimension_numbers = #tpu.dot_dimension_numbers<[1], [0], [0], [1], [0, 0, 1, 1], [], []>} : vector<64x32xbf16>, vector<32x128xbf16>, vector<64x128xf32> -> vector<64x128xf32>
    %54 = arith.truncf %53 : vector<64x128xf32> to vector<64x128xbf16>
    %cst_34 = arith.constant dense<0.000000e+00> : vector<64x128xf32>
    %55 = tpu.matmul %1, %54, %cst_34 {dimension_numbers = #tpu.dot_dimension_numbers<[1], [0], [0], [1], [0, 0, 1, 1], [], []>} : vector<64x64xbf16>, vector<64x128xbf16>, vector<64x128xf32> -> vector<64x128xf32>
    %c0_35 = arith.constant 0 : index
    %c0_36 = arith.constant 0 : index
    %56 = vector.load %arg12[%c0_35, %c0_36] : memref<1x128xf32, #tpu.memory_space<vmem>>, vector<1x128xf32>
    %57 = vector.broadcast %56 : vector<1x128xf32> to vector<64x128xf32>
    %58 = arith.addf %55, %57 : vector<64x128xf32>
    %cst_37 = arith.constant dense<0xFF800000> : vector<64xf32>
    %59 = vector.multi_reduction <maximumf>, %58, %cst_37 [1] : vector<64x128xf32> to vector<64xf32>
    %60 = vector.shape_cast %59 : vector<64xf32> to vector<64x1xf32>
    %61 = vector.broadcast %60 : vector<64x1xf32> to vector<64x128xf32>
    %62 = arith.subf %58, %61 : vector<64x128xf32>
    %63 = math.exp %62 : vector<64x128xf32>
    %cst_38 = arith.constant dense<0.000000e+00> : vector<64xf32>
    %64 = vector.multi_reduction <add>, %63, %cst_38 [1] : vector<64x128xf32> to vector<64xf32>
    %65 = vector.shape_cast %64 : vector<64xf32> to vector<64x1xf32>
    %66 = vector.broadcast %65 : vector<64x1xf32> to vector<64x128xf32>
    %67 = arith.divf %63, %66 : vector<64x128xf32>
    %c0_39 = arith.constant 0 : index
    %c0_40 = arith.constant 0 : index
    %c0_41 = arith.constant 0 : index
    %68 = vector.load %arg13[%c0_39, %c0_40, %c0_41] : memref<1x64x128xf32, #tpu.memory_space<vmem>>, vector<1x64x128xf32>
    %69 = vector.shape_cast %68 : vector<1x64x128xf32> to vector<64x128xf32>
    %70 = vector.shape_cast %67 : vector<64x128xf32> to vector<1x64x128xf32>
    tpu.vector_store %arg13[%c0_39, %c0_40, %c0_41], %70 {strides = array<i32>} : memref<1x64x128xf32, #tpu.memory_space<vmem>>, vector<1x64x128xf32>,
    return
  }
  func.func @transform_0(%arg0: i32) -> (i32, i32, i32) {
    %c0_i32 = arith.constant 0 : i32
    %c0_i32_0 = arith.constant 0 : i32
    %c0_i32_1 = arith.constant 0 : i32
    return %arg0, %c0_i32, %c0_i32_0 : i32, i32, i32
  }
  func.func @transform_1(%arg0: i32) -> (i32, i32, i32) {
    %c0_i32 = arith.constant 0 : i32
    %c0_i32_0 = arith.constant 0 : i32
    %c0_i32_1 = arith.constant 0 : i32
    return %arg0, %c0_i32, %c0_i32_0 : i32, i32, i32
  }
  func.func @transform_2(%arg0: i32) -> (i32, i32) {
    %c0_i32 = arith.constant 0 : i32
    %c0_i32_0 = arith.constant 0 : i32
    %c0_i32_1 = arith.constant 0 : i32
    return %c0_i32, %c0_i32_0 : i32, i32
  }
  func.func @transform_3(%arg0: i32) -> (i32, i32) {
    %c0_i32 = arith.constant 0 : i32
    %c0_i32_0 = arith.constant 0 : i32
    %c0_i32_1 = arith.constant 0 : i32
    return %c0_i32, %c0_i32_0 : i32, i32
  }
  func.func @transform_4(%arg0: i32) -> (i32, i32) {
    %c0_i32 = arith.constant 0 : i32
    %c0_i32_0 = arith.constant 0 : i32
    %c0_i32_1 = arith.constant 0 : i32
    return %c0_i32, %c0_i32_0 : i32, i32
  }
  func.func @transform_5(%arg0: i32) -> (i32, i32) {
    %c0_i32 = arith.constant 0 : i32
    %c0_i32_0 = arith.constant 0 : i32
    %c0_i32_1 = arith.constant 0 : i32
    return %c0_i32, %c0_i32_0 : i32, i32
  }
  func.func @transform_6(%arg0: i32) -> (i32, i32) {
    %c0_i32 = arith.constant 0 : i32
    %c0_i32_0 = arith.constant 0 : i32
    %c0_i32_1 = arith.constant 0 : i32
    return %c0_i32, %c0_i32_0 : i32, i32
  }
  func.func @transform_7(%arg0: i32) -> (i32, i32) {
    %c0_i32 = arith.constant 0 : i32
    %c0_i32_0 = arith.constant 0 : i32
    %c0_i32_1 = arith.constant 0 : i32
    return %c0_i32, %c0_i32_0 : i32, i32
  }
  func.func @transform_8(%arg0: i32) -> (i32, i32) {
    %c0_i32 = arith.constant 0 : i32
    %c0_i32_0 = arith.constant 0 : i32
    %c0_i32_1 = arith.constant 0 : i32
    return %c0_i32, %c0_i32_0 : i32, i32
  }
  func.func @transform_9(%arg0: i32) -> (i32, i32) {
    %c0_i32 = arith.constant 0 : i32
    %c0_i32_0 = arith.constant 0 : i32
    %c0_i32_1 = arith.constant 0 : i32
    return %c0_i32, %c0_i32_0 : i32, i32
  }
  func.func @transform_10(%arg0: i32) -> (i32, i32) {
    %c0_i32 = arith.constant 0 : i32
    %c0_i32_0 = arith.constant 0 : i32
    %c0_i32_1 = arith.constant 0 : i32
    return %c0_i32, %c0_i32_0 : i32, i32
  }
  func.func @transform_11(%arg0: i32) -> (i32, i32) {
    %c0_i32 = arith.constant 0 : i32
    %c0_i32_0 = arith.constant 0 : i32
    %c0_i32_1 = arith.constant 0 : i32
    return %c0_i32, %c0_i32_0 : i32, i32
  }
  func.func @transform_12(%arg0: i32) -> (i32, i32, i32) {
    %c0_i32 = arith.constant 0 : i32
    %c0_i32_0 = arith.constant 0 : i32
    %c0_i32_1 = arith.constant 0 : i32
    return %arg0, %c0_i32, %c0_i32_0 : i32, i32, i32
  }
}

</mosaic_0001>

<bundles_post_ra>
// kernel: gcn_attention_forward_batched.1
= control target key start
LH: loop header
LB: loop body
LE: loop exit
PB: predicated region body
PF: predicated region fallthrough
CT: control target
= control target key end

     0   :  { %s1596_s21 = smov 0   ;;  %s1818_s0 = inlined_call_operand.vmem [shape: bf16[2,64,64], index: 0, kind: input, shape index: {}]   ;;  %s1819_s1 = inlined_call_operand.vmem [shape: f32[2,64,16], index: 1, kind: input, shape index: {}]   ;;  %s1820_s2 = inlined_call_operand.vmem [shape: bf16[16,32], index: 2, kind: input, shape index: {}]   ;;  %s1821_s3 = inlined_call_operand.vmem [shape: f32[1,32], index: 3, kind: input, shape index: {}]   ;;  %s1822_s4 = inlined_call_operand.vmem [shape: bf16[32,32], index: 4, kind: input, shape index: {}]   ;;  %s1823_s5 = inlined_call_operand.vmem [shape: f32[1,32], index: 5, kind: input, shape index: {}]   ;;  %s1824_s6 = inlined_call_operand.vmem [shape: bf16[32,32], index: 6, kind: input, shape index: {}]   ;;  %s1825_s7 = inlined_call_operand.vmem [shape: f32[1,32], index: 7, kind: input, shape index: {}]   ;;  %s1826_s8 = inlined_call_operand.vmem [shape: bf16[32,32], index: 8, kind: input, shape index: {}]   ;;  %s1827_s9 = inlined_call_operand.vmem [shape: f32[1,32], index: 9, kind: input, shape index: {}]   ;;  %s1828_s10 = inlined_call_operand.vmem [shape: bf16[32,128], index: 10, kind: input, shape index: {}]   ;;  %s1829_s11 = inlined_call_operand.vmem [shape: f32[1,128], index: 11, kind: input, shape index: {}]   ;;  %s1830_s12 = inlined_call_operand.vmem [shape: f32[2,64,128], index: 12, kind: output, shape index: {}]  }
   0x1 LB: > { %s1326_s22 = sadd.s32 4294967295, %s1529_s21   ;;  %p1330_p0 = scmp.ge.s32.totalorder %s1529_s21, 1  ;;  %s1529_s21 = sphi %s1596_s21, %s22_s21  }
   0x2   : > { %p372_p1 = scmp.lt.s32.totalorder %s1529_s21, 3 }
   0x4   : > { %p373_p2 = pnand %p1330_p0, %p372_p1 }
   0x5   : > { %p419_p3 = scmp.lt.s32.totalorder (!%p373_p2), %s1326_s22, 1 }
   0x6   : > { %376 = sbr.rel (%p373_p2) target bundleno = 1605 (0x645), region = 68 }
   0xb   : > { %v1434_v0 = vld [vmem:[%s1820_s2] sm:$0xff]  ;;  %s1832_s22 = smov (!%p419_p3, %s1326_s22), 1  ;;  %vm463_vm0 = vcmask 130048   ;;  %vm533_vm1 = vcmask 523264   ;;  %v1436_v29 = vld [vmem:[%s1822_s4 + $0x8] sm:$0xff]  ;;  %vm607_vm2 = vcmask 261120  }
   0xc   : > { %1444 = vmatpush.bf16.msra.mxu2 %v1434_v0  ;;  %1445 = vmatpush.bf16.msra.mxu3 %v1434_v0  ;;  %s1428_s25 = sshll.u32 %s1832_s22, 6  ;;  %s1427_s29 = sshll.u32 %s1832_s22, 5  ;;  %v1438_v30 = vld [vmem:[%s1824_s6 + $0x8] sm:$0xff]  ;;  %v1435_v32 = vld [vmem:[%s1822_s4] sm:$0xff] }
   0xd   : > { %1443 = vmatpush.bf16.msra.mxu1 %v1434_v0  ;;  %483 = vmatpush.bf16.msra.mxu0 %v1434_v0  ;;  %s428_s28 = scalar_lea.vmem %s1819_s1, %s1428_s25  ;;  %s1619_s14 = scalar_lea.vmem %s1818_s0, %s1427_s29  ;;  %v1440_v31 = vld [vmem:[%s1826_s8 + $0x8] sm:$0xff]  ;;  %v1437_v33 = vld [vmem:[%s1824_s6] sm:$0xff] }
   0xe   : > { %v447_v1 = vld [vmem:[%s428_s28 + $0x20] sm:$0xff]  ;;  %v448_v2 = vld [vmem:[%s428_s28 + $0x28] sm:$0xff]  ;;  %v449_v3 = vld [vmem:[%s428_s28 + $0x30] sm:$0xff]  ;;  %s1797_s13 = scalar_lea.vmem %s1830_s12, %s1428_s25 }
   0xf   : > { %v453_v4 = vpack.c.bf16 %v448_v2, %v447_v1  ;;  %v450_v5 = vld [vmem:[%s428_s28 + $0x38] sm:$0xff]  ;;  %v445_v6 = vld [vmem:[%s428_s28 + $0x10] sm:$0xff]  ;;  %v443_v10 = vld [vmem:[%s428_s28] sm:$0xff] }
  0x10   : > { %v446_v7 = vld [vmem:[%s428_s28 + $0x18] sm:$0xff]  ;;  %v454_v8 = vpack.c.bf16 %v450_v5, %v449_v3  ;;  %v444_v11 = vld [vmem:[%s428_s28 + $0x8] sm:$0xff]  ;;  %v1622_v25 = vld [vmem:[%s1619_s14] sm:$0xff]  ;;  %626 = vmatpush.bf16.msrb.mxu2 %v1436_v29  ;;  %675 = vmatpush.bf16.msrb.mxu3 %v1438_v30 }
  0x11   : > { %v452_v9 = vpack.c.bf16 %v446_v7, %v445_v6  ;;  %1343 = vmatmul.msk.bf16.vlgmr.msra.gmra.mxu2 %vm463_vm0, %v453_v4  ;;  %v451_v12 = vpack.c.bf16 %v444_v11, %v443_v10  ;;  %v1627_v26 = vld [vmem:[%s1619_s14 + $0x8] sm:$0xff]  ;;  %v1632_v27 = vld [vmem:[%s1619_s14 + $0x10] sm:$0xff]  ;;  %v1637_v28 = vld [vmem:[%s1619_s14 + $0x18] sm:$0xff]  ;;  %724 = vmatpush.bf16.msrb.mxu0 %v1440_v31 }
  0x12   : > { %1344 = vmatmul.msk.bf16.vlgmr.msra.gmra.mxu3 %vm463_vm0, %v454_v8  ;;  %v1439_v34 = vld [vmem:[%s1826_s8] sm:$0xff] }
  0x13   : > { %1342 = vmatmul.msk.bf16.vlgmr.msra.gmra.mxu1 %vm463_vm0, %v452_v9  ;;  %1341 = vmatmul.msk.bf16.vlgmr.msra.gmra.mxu0 %vm463_vm0, %v451_v12  ;;  %v1454_v36 = vld [vmem:[%s1821_s3] ss:$0 sm:$0xff] }
  0x14   : > { %627 = vmatpush.bf16.msrb.mxu2 %v1435_v32  ;;  %676 = vmatpush.bf16.msrb.mxu3 %v1437_v33  ;;  %v1457_v3 = vld [vmem:[%s1825_s7] ss:$0 sm:$0xff] }
  0x15   : > { %725 = vmatpush.bf16.msrb.mxu0 %v1439_v34 }
  0x90   : > { %v490_v15 = vpop.f32.mrf.mxu1  ;;  %v485_v16 = vpop.f32.mrf.mxu0 }
  0x94   : > { %v495_v13 = vpop.f32.mrf.mxu2 }
  0x95   : > { %v500_v14 = vpop.f32.mrf.mxu3 }
  0x98   : > { %v492_v21 = vpop.f32.mrf.mxu1  ;;  %v487_v23 = vpop.f32.mrf.mxu0 }
  0x99   : > { %v506_v22 = vpack.c.bf16 %v492_v21, %v490_v15  ;;  %v505_v24 = vpack.c.bf16 %v487_v23, %v485_v16 }
  0x9c   : > { %v497_v19 = vpop.f32.mrf.mxu2 }
  0x9d   : > { %v502_v17 = vpop.f32.mrf.mxu3  ;;  %v507_v20 = vpack.c.bf16 %v497_v19, %v495_v13 }
  0x9e   : > { %v508_v18 = vpack.c.bf16 %v502_v17, %v500_v14 }
  0xa0   : > { %550 = vmatpush.bf16.msrb.mxu1 %v508_v18  ;;  %v1455_v18 = vld [vmem:[%s1827_s9] ss:$0 sm:$0xff] }
  0xa4   : > { %551 = vmatpush.bf16.msrb.mxu1 %v507_v20 }
  0xa8   : > { %552 = vmatpush.bf16.msrb.mxu1 %v506_v22 }
  0xac   : > { %553 = vmatpush.bf16.msrb.mxu1 %v505_v24 }
  0xaf   : > { %1361 = vmatmul.msk.bf16.vlgmr.msrb.gmra.mxu1 %vm533_vm1, %v1622_v25 }
  0xbf   : > { %1362 = vmatmul.msk.bf16.gmra.mxu1 %vm533_vm1, %v1627_v26 }
  0xcf   : > { %1363 = vmatmul.msk.bf16.gmra.mxu1 %vm533_vm1, %v1632_v27 }
  0xdf   : > { %1364 = vmatmul.msk.bf16.gmra.mxu1 %vm533_vm1, %v1637_v28 }
 0x12c   : > { %v555_v35 = vpop.f32.mrf.mxu1 }
 0x12d   : > { %v556_v37 = vadd.f32 %v1454_v36, %v555_v35 }
 0x12f   : > { %v575_v40 = vmax.f32 %v556_v37, 0.0 }
 0x134   : > { %v557_v38 = vpop.f32.mrf.mxu1 }
 0x135   : > { %v558_v39 = vadd.f32 %v1454_v36, %v557_v38 }
 0x137   : > { %v576_v41 = vmax.f32 %v558_v39, 0.0 }
 0x139   : > { %v583_v42 = vpack.c.bf16 %v576_v41, %v575_v40 }
 0x13b   : > { %1373 = vmatmul.msk.bf16.vlgmr.msrb.gmra.mxu2 %vm607_vm2, %v583_v42  ;;  %1385 = vmatmul.msk.bf16.vlgmr.msrb.gmra.mxu3 %vm607_vm2, %v583_v42 }
 0x13c   : > { %1397 = vmatmul.msk.bf16.vlgmr.msrb.gmra.mxu0 %vm607_vm2, %v583_v42  ;;  %v560_v43 = vpop.f32.mrf.mxu1 }
 0x13d   : > { %v561_v44 = vadd.f32 %v1454_v36, %v560_v43 }
 0x13f   : > { %v577_v47 = vmax.f32 %v561_v44, 0.0 }
 0x144   : > { %v562_v45 = vpop.f32.mrf.mxu1 }
 0x145   : > { %v563_v46 = vadd.f32 %v1454_v36, %v562_v45 }
 0x147   : > { %v578_v48 = vmax.f32 %v563_v46, 0.0 }
 0x149   : > { %v584_v49 = vpack.c.bf16 %v578_v48, %v577_v47 }
 0x14b   : > { %1374 = vmatmul.msk.bf16.gmra.mxu2 %vm607_vm2, %v584_v49  ;;  %1386 = vmatmul.msk.bf16.gmra.mxu3 %vm607_vm2, %v584_v49 }
 0x14c   : > { %1398 = vmatmul.msk.bf16.gmra.mxu0 %vm607_vm2, %v584_v49  ;;  %v565_v50 = vpop.f32.mrf.mxu1 }
 0x14d   : > { %v566_v51 = vadd.f32 %v1454_v36, %v565_v50 }
 0x14f   : > { %v579_v54 = vmax.f32 %v566_v51, 0.0 }
 0x154   : > { %v567_v52 = vpop.f32.mrf.mxu1 }
 0x155   : > { %v568_v53 = vadd.f32 %v1454_v36, %v567_v52  ;;  %v1456_v52 = vld [vmem:[%s1823_s5] ss:$0 sm:$0xff] }
 0x157   : > { %v580_v55 = vmax.f32 %v568_v53, 0.0 }
 0x159   : > { %v585_v56 = vpack.c.bf16 %v580_v55, %v579_v54 }
 0x15b   : > { %1375 = vmatmul.msk.bf16.gmra.mxu2 %vm607_vm2, %v585_v56  ;;  %1387 = vmatmul.msk.bf16.gmra.mxu3 %vm607_vm2, %v585_v56 }
 0x15c   : > { %1399 = vmatmul.msk.bf16.gmra.mxu0 %vm607_vm2, %v585_v56  ;;  %v570_v57 = vpop.f32.mrf.mxu1 }
 0x15d   : > { %v571_v58 = vadd.f32 %v1454_v36, %v570_v57 }
 0x15f   : > { %v581_v61 = vmax.f32 %v571_v58, 0.0 }
 0x164   : > { %v572_v59 = vpop.f32.mrf.mxu1 }
 0x165   : > { %v573_v60 = vadd.f32 %v1454_v36, %v572_v59 }
 0x167   : > { %v582_v62 = vmax.f32 %v573_v60, 0.0 }
 0x169   : > { %v586_v63 = vpack.c.bf16 %v582_v62, %v581_v61 }
 0x16b   : > { %1376 = vmatmul.msk.bf16.gmra.mxu2 %vm607_vm2, %v586_v63  ;;  %1388 = vmatmul.msk.bf16.gmra.mxu3 %vm607_vm2, %v586_v63 }
 0x16c   : > { %1400 = vmatmul.msk.bf16.gmra.mxu0 %vm607_vm2, %v586_v63 }
 0x1b9   : > { %v727_v0 = vpop.f32.mrf.mxu0 }
 0x1ba   : > { %v1701_v42 = vadd.f32 %v1455_v18, %v727_v0 }
 0x1be   : > { %v678_v1 = vpop.f32.mrf.mxu3  ;;  %v629_v38 = vpop.f32.mrf.mxu2 }
 0x1bf   : > { %v679_v5 = vadd.f32 %v1457_v3, %v678_v1  ;;  %v630_v55 = vadd.f32 %v1456_v52, %v629_v38 }
 0x1c1   : > { %v729_v2 = vpop.f32.mrf.mxu0 }
 0x1c2   : > { %v1697_v39 = vadd.f32 %v1455_v18, %v729_v2 }
 0x1c4   : > { %v908_v44 = vpack.c.bf16 %v1697_v39, %v1701_v42 }
 0x1c6   : > { %v680_v4 = vpop.f32.mrf.mxu3  ;;  %v631_v48 = vpop.f32.mrf.mxu2 }
 0x1c7   : > { %v681_v6 = vadd.f32 %v1457_v3, %v680_v4  ;;  %v632_v54 = vadd.f32 %v1456_v52, %v631_v48 }
 0x1c9   : > { %v751_v7 = vpack.c.bf16 %v681_v6, %v679_v5  ;;  %v732_v8 = vpop.f32.mrf.mxu0  ;;  %v747_v56 = vpack.c.bf16 %v632_v54, %v630_v55 }
 0x1ca   : > { %v1694_v35 = vadd.f32 %v1455_v18, %v732_v8 }
 0x1cb   : > { %v768_v53 = vsel %vm607_vm2, %v751_v7, 0  ;;  %v435_v7 = vld [vmem:[%s1619_s14] sm:$0xff]  }
 0x1cc   : > { %v808_v8 = vunpack.c.l.bf16 %v435_v7 }
 0x1ce   : > { %v683_v9 = vpop.f32.mrf.mxu3  ;;  %v634_v51 = vpop.f32.mrf.mxu2 }
 0x1cf   : > { %v684_v47 = vadd.f32 %v1457_v3, %v683_v9  ;;  %v635_v60 = vadd.f32 %v1456_v52, %v634_v51 }
 0x1d1   : > { %v734_v10 = vpop.f32.mrf.mxu0 }
 0x1d2   : > { %v1690_v32 = vadd.f32 %v1455_v18, %v734_v10 }
 0x1d4   : > { %v909_v40 = vpack.c.bf16 %v1690_v32, %v1694_v35 }
 0x1d6   : > { %v685_v11 = vpop.f32.mrf.mxu3  ;;  %v636_v57 = vpop.f32.mrf.mxu2 }
 0x1d7   : > { %v686_v45 = vadd.f32 %v1457_v3, %v685_v11  ;;  %v637_v59 = vadd.f32 %v1456_v52, %v636_v57 }
 0x1d9   : > { %v737_v12 = vpop.f32.mrf.mxu0  ;;  %v752_v49 = vpack.c.bf16 %v686_v45, %v684_v47  ;;  %v748_v61 = vpack.c.bf16 %v637_v59, %v635_v60  ;;  %v441_v45 = vld [vmem:[%s1619_s14 + $0x18] sm:$0xff]  }
 0x1da   : > { %v1688_v24 = vadd.f32 %v1455_v18, %v737_v12  ;;  %v809_v12 = vunpack.c.h.bf16 %v435_v7  ;;  %v814_v47 = vunpack.c.l.bf16 %v441_v45  ;;  %v815_v51 = vunpack.c.h.bf16 %v441_v45 }
 0x1db   : > { %v771_v50 = vsel %vm607_vm2, %v752_v49, 0 }
 0x1de   : > { %v688_v13 = vpop.f32.mrf.mxu3  ;;  %v639_v58 = vpop.f32.mrf.mxu2 }
 0x1df   : > { %v689_v41 = vadd.f32 %v1457_v3, %v688_v13  ;;  %v640_v0 = vadd.f32 %v1456_v52, %v639_v58 }
 0x1e1   : > { %v739_v14 = vpop.f32.mrf.mxu0 }
 0x1e2   : > { %v1684_v22 = vadd.f32 %v1455_v18, %v739_v14 }
 0x1e4   : > { %v910_v33 = vpack.c.bf16 %v1684_v22, %v1688_v24 }
 0x1e6   : > { %v690_v15 = vpop.f32.mrf.mxu3  ;;  %v641_v62 = vpop.f32.mrf.mxu2 }
 0x1e7   : > { %v691_v36 = vadd.f32 %v1457_v3, %v690_v15  ;;  %v642_v63 = vadd.f32 %v1456_v52, %v641_v62  ;;  %v437_v15 = vld [vmem:[%s1619_s14 + $0x8] sm:$0xff]  }
 0x1e9   : > { %v742_v16 = vpop.f32.mrf.mxu0  ;;  %v753_v43 = vpack.c.bf16 %v691_v36, %v689_v41  ;;  %v749_v2 = vpack.c.bf16 %v642_v63, %v640_v0 }
 0x1ea   : > { %v1680_v20 = vadd.f32 %v1455_v18, %v742_v16 }
 0x1eb   : > { %v774_v46 = vsel %vm607_vm2, %v753_v43, 0 }
 0x1ee   : > { %v693_v17 = vpop.f32.mrf.mxu3  ;;  %v644_v1 = vpop.f32.mrf.mxu2 }
 0x1ef   : > { %v694_v30 = vadd.f32 %v1457_v3, %v693_v17  ;;  %v645_v5 = vadd.f32 %v1456_v52, %v644_v1  ;;  %v810_v17 = vunpack.c.l.bf16 %v437_v15 }
 0x1f1   : > { %v744_v19 = vpop.f32.mrf.mxu0 }
 0x1f2   : > { %v1682_v21 = vadd.f32 %v1455_v18, %v744_v19 }
 0x1f4   : > { %v911_v23 = vpack.c.bf16 %v1682_v21, %v1680_v20 }
 0x1f6   : > { %928 = vmatpush.bf16.msra.mxu3 %v911_v23  ;;  %v695_v29 = vpop.f32.mrf.mxu3 }
 0x1f7   : > { %v696_v31 = vadd.f32 %v1457_v3, %v695_v29  ;;  %v646_v3 = vpop.f32.mrf.mxu2  ;;  %v811_v29 = vunpack.c.h.bf16 %v437_v15 }
 0x1f8   : > { %v647_v4 = vadd.f32 %v1456_v52, %v646_v3 }
 0x1f9   : > { %v754_v34 = vpack.c.bf16 %v696_v31, %v694_v30 }
 0x1fa   : > { %929 = vmatpush.bf16.msra.mxu3 %v910_v33  ;;  %v750_v6 = vpack.c.bf16 %v647_v4, %v645_v5  ;;  %v439_v33 = vld [vmem:[%s1619_s14 + $0x10] sm:$0xff]  }
 0x1fb   : > { %v777_v37 = vsel %vm607_vm2, %v754_v34, 0  ;;  %v812_v36 = vunpack.c.l.bf16 %v439_v33  ;;  %v813_v41 = vunpack.c.h.bf16 %v439_v33 }
 0x1fc   : > { %783 = vmatpush.bf16.xpose.msra.mxu2 %v777_v37 }
 0x1fe   : > { %930 = vmatpush.bf16.msra.mxu3 %v909_v40 }
 0x202   : > { %931 = vmatpush.bf16.msra.mxu3 %v908_v44 }
 0x204   : > { %784 = vmatpush.bf16.xpose.msra.mxu2 %v774_v46 }
 0x20c   : > { %785 = vmatpush.bf16.xpose.msra.mxu2 %v771_v50 }
 0x214   : > { %786 = vmatpush.bf16.xpose.msra.mxu2 %v768_v53 }
 0x21b   : > { %1401 = vmatmul.msk.bf16.vlgmr.msra.gmra.mxu2 %vm607_vm2, %v747_v56 }
 0x22b   : > { %1402 = vmatmul.msk.bf16.gmra.mxu2 %vm607_vm2, %v748_v61 }
 0x23b   : > { %1403 = vmatmul.msk.bf16.gmra.mxu2 %vm607_vm2, %v749_v2 }
 0x24b   : > { %1404 = vmatmul.msk.bf16.gmra.mxu2 %vm607_vm2, %v750_v6 }
 0x29e   : > { %v788_v9 = vpop.f32.mrf.mxu2 }
 0x29f   : > { %v816_v10 = vmul.f32 %v808_v8, %v788_v9 }
 0x2a1   : > { %v824_v11 = vsel %vm533_vm1, %v816_v10, -inf }
 0x2a2   : > { %825 = vmax.xlane.f32.xlu0 %v824_v11 }
 0x2a6   : > { %v790_v13 = vpop.f32.mrf.mxu2 }
 0x2a7   : > { %v817_v14 = vmul.f32 %v809_v12, %v790_v13 }
 0x2a9   : > { %v827_v16 = vsel %vm533_vm1, %v817_v14, -inf }
 0x2aa   : > { %828 = vmax.xlane.f32.xlu0 %v827_v16 }
 0x2ae   : > { %v793_v18 = vpop.f32.mrf.mxu2 }
 0x2af   : > { %v818_v19 = vmul.f32 %v810_v17, %v793_v18 }
 0x2b1   : > { %v830_v23 = vsel %vm533_vm1, %v818_v19, -inf }
 0x2b2   : > { %831 = vmax.xlane.f32.xlu1 %v830_v23 }
 0x2b6   : > { %v795_v30 = vpop.f32.mrf.mxu2 }
 0x2b7   : > { %v819_v31 = vmul.f32 %v811_v29, %v795_v30 }
 0x2b9   : > { %v833_v34 = vsel %vm533_vm1, %v819_v31, -inf }
 0x2ba   : > { %834 = vmax.xlane.f32.xlu1 %v833_v34 }
 0x2be   : > { %v798_v37 = vpop.f32.mrf.mxu2 }
 0x2bf   : > { %v820_v38 = vmul.f32 %v812_v36, %v798_v37 }
 0x2c1   : > { %v836_v40 = vsel %vm533_vm1, %v820_v38, -inf }
 0x2c2   : > { %837 = vmax.xlane.f32.xlu2 %v836_v40 }
 0x2c6   : > { %v800_v43 = vpop.f32.mrf.mxu2 }
 0x2c7   : > { %v821_v44 = vmul.f32 %v813_v41, %v800_v43 }
 0x2c9   : > { %v839_v46 = vsel %vm533_vm1, %v821_v44, -inf }
 0x2ca   : > { %840 = vmax.xlane.f32.xlu2 %v839_v46 }
 0x2ce   : > { %v803_v48 = vpop.f32.mrf.mxu2 }
 0x2cf   : > { %v822_v49 = vmul.f32 %v814_v47, %v803_v48  ;;  %v1442_v47 = vld [vmem:[%s1828_s10 + $0x8] sm:$0xff]  ;;  %v1441_v48 = vld [vmem:[%s1828_s10] sm:$0xff] }
 0x2d0   : > { %1015 = vmatpush.bf16.msra.mxu1 %v1442_v47 }
 0x2d1   : > { %v842_v50 = vsel %vm533_vm1, %v822_v49, -inf }
 0x2d2   : > { %843 = vmax.xlane.f32.xlu0 %v842_v50 }
 0x2d4   : > { %1016 = vmatpush.bf16.msra.mxu1 %v1441_v48 }
 0x2d6   : > { %v805_v52 = vpop.f32.mrf.mxu2 }
 0x2d7   : > { %v823_v53 = vmul.f32 %v815_v51, %v805_v52 }
 0x2d9   : > { %v845_v54 = vsel %vm533_vm1, %v823_v53, -inf }
 0x2da   : > { %846 = vmax.xlane.f32.xlu1 %v845_v54 }
 0x315   : > { %v826_v55 = vpop.xlane.xlu0 %825 }
 0x316   : > { %v848_v56 = vsub.f32 %v816_v10, %v826_v55 }
 0x318   : > { %v856_v57 = vmul.f32 1.442695, %v848_v56 }
 0x31a   : > { %1459 = vpow2.f32 %v856_v57 }
 0x31d   : > { %v829_v58 = vpop.xlane.xlu0 %828 }
 0x31e   : > { %v849_v59 = vsub.f32 %v817_v14, %v829_v58 }
 0x320   : > { %v1460_v60 = vpop.eup %1459  ;;  %v858_v61 = vmul.f32 1.442695, %v849_v59 }
 0x321   : > { %v872_v62 = vsel %vm533_vm1, %v1460_v60, 0.0 }
 0x322   : > { %1461 = vpow2.f32 %v858_v61  ;;  %873 = vadd.xlane.f32.xlu2 %v872_v62 }
 0x325   : > { %v832_v63 = vpop.xlane.xlu1 %831 }
 0x326   : > { %v850_v0 = vsub.f32 %v818_v19, %v832_v63 }
 0x328   : > { %v1462_v1 = vpop.eup %1461  ;;  %v860_v2 = vmul.f32 1.442695, %v850_v0 }
 0x329   : > { %v904_v3 = vpack.c.bf16 %v1462_v1, %v1460_v60  ;;  %v875_v4 = vsel %vm533_vm1, %v1462_v1, 0.0 }
 0x32a   : > { %1463 = vpow2.f32 %v860_v2  ;;  %876 = vadd.xlane.f32.xlu0 %v875_v4 }
 0x32b   : > { %1405 = vmatmul.msk.bf16.vlgmr.msra.gmra.mxu3 %vm533_vm1, %v904_v3 }
 0x32d   : > { %v835_v5 = vpop.xlane.xlu1 %834 }
 0x32e   : > { %v851_v6 = vsub.f32 %v819_v31, %v835_v5 }
 0x330   : > { %v1464_v7 = vpop.eup %1463  ;;  %v862_v8 = vmul.f32 1.442695, %v851_v6 }
 0x331   : > { %v878_v9 = vsel %vm533_vm1, %v1464_v7, 0.0 }
 0x332   : > { %1465 = vpow2.f32 %v862_v8  ;;  %879 = vadd.xlane.f32.xlu1 %v878_v9 }
 0x335   : > { %v838_v10 = vpop.xlane.xlu2 %837 }
 0x336   : > { %v852_v11 = vsub.f32 %v820_v38, %v838_v10 }
 0x338   : > { %v1466_v12 = vpop.eup %1465  ;;  %v864_v13 = vmul.f32 1.442695, %v852_v11 }
 0x339   : > { %v881_v14 = vsel %vm533_vm1, %v1466_v12, 0.0  ;;  %v905_v15 = vpack.c.bf16 %v1466_v12, %v1464_v7 }
 0x33a   : > { %1467 = vpow2.f32 %v864_v13  ;;  %882 = vadd.xlane.f32.xlu2 %v881_v14 }
 0x33b   : > { %1406 = vmatmul.msk.bf16.gmra.mxu3 %vm533_vm1, %v905_v15 }
 0x33d   : > { %v841_v16 = vpop.xlane.xlu2 %840 }
 0x33e   : > { %v853_v17 = vsub.f32 %v821_v44, %v841_v16 }
 0x340   : > { %v1468_v18 = vpop.eup %1467  ;;  %v866_v19 = vmul.f32 1.442695, %v853_v17 }
 0x341   : > { %v884_v23 = vsel %vm533_vm1, %v1468_v18, 0.0 }
 0x342   : > { %1469 = vpow2.f32 %v866_v19  ;;  %885 = vadd.xlane.f32.xlu0 %v884_v23 }
 0x345   : > { %v844_v29 = vpop.xlane.xlu0 %843 }
 0x346   : > { %v854_v30 = vsub.f32 %v822_v49, %v844_v29 }
 0x348   : > { %v1470_v31 = vpop.eup %1469  ;;  %v868_v33 = vmul.f32 1.442695, %v854_v30 }
 0x349   : > { %v887_v34 = vsel %vm533_vm1, %v1470_v31, 0.0  ;;  %v906_v36 = vpack.c.bf16 %v1470_v31, %v1468_v18 }
 0x34a   : > { %1471 = vpow2.f32 %v868_v33  ;;  %888 = vadd.xlane.f32.xlu1 %v887_v34 }
 0x34b   : > { %1407 = vmatmul.msk.bf16.gmra.mxu3 %vm533_vm1, %v906_v36 }
 0x34d   : > { %v847_v37 = vpop.xlane.xlu1 %846 }
 0x34e   : > { %v855_v38 = vsub.f32 %v823_v53, %v847_v37 }
 0x350   : > { %v1472_v40 = vpop.eup %1471  ;;  %v870_v41 = vmul.f32 1.442695, %v855_v38 }
 0x351   : > { %v890_v43 = vsel %vm533_vm1, %v1472_v40, 0.0 }
 0x352   : > { %1473 = vpow2.f32 %v870_v41  ;;  %891 = vadd.xlane.f32.xlu2 %v890_v43 }
 0x358   : > { %v1474_v44 = vpop.eup %1473 }
 0x359   : > { %v893_v45 = vsel %vm533_vm1, %v1474_v44, 0.0  ;;  %v907_v46 = vpack.c.bf16 %v1474_v44, %v1472_v40 }
 0x35a   : > { %894 = vadd.xlane.f32.xlu0 %v893_v45 }
 0x35b   : > { %1408 = vmatmul.msk.bf16.gmra.mxu3 %vm533_vm1, %v907_v46 }
 0x395   : > { %v874_v49 = vpop.xlane.xlu2 %873 }
 0x396   : > { %1475 = vrcp.f32 %v874_v49 }
 0x39c   : > { %v1476_v52 = vpop.eup %1475 }
 0x39d   : > { %v877_v50 = vpop.xlane.xlu0 %876 }
 0x39e   : > { %1477 = vrcp.f32 %v877_v50 }
 0x3a4   : > { %v1478_v54 = vpop.eup %1477 }
 0x3a5   : > { %v880_v58 = vpop.xlane.xlu1 %879 }
 0x3a6   : > { %1479 = vrcp.f32 %v880_v58 }
 0x3ac   : > { %v1480_v1 = vpop.eup %1479 }
 0x3ad   : > { %v883_v62 = vpop.xlane.xlu2 %882 }
 0x3ae   : > { %v933_v51 = vpop.f32.mrf.mxu3  ;;  %1481 = vrcp.f32 %v883_v62 }
 0x3af   : > { %v953_v53 = vmul.f32 %v1476_v52, %v933_v51 }
 0x3b1   : > { %v961_v56 = vadd.f32 %v953_v53, %v1701_v42  ;;  %v1458_v53 = vld [vmem:[%s1829_s11] ss:$0 sm:$0xff] }
 0x3b3   : > { %v969_v60 = vmax.f32 %v961_v56, 0.0 }
 0x3b4   : > { %v1482_v3 = vpop.eup %1481 }
 0x3b5   : > { %v886_v6 = vpop.xlane.xlu0 %885 }
 0x3b6   : > { %v935_v55 = vpop.f32.mrf.mxu3  ;;  %1483 = vrcp.f32 %v886_v6 }
 0x3b7   : > { %v954_v57 = vmul.f32 %v1478_v54, %v935_v55 }
 0x3b9   : > { %v962_v59 = vadd.f32 %v954_v57, %v1697_v39 }
 0x3bb   : > { %v970_v61 = vmax.f32 %v962_v59, 0.0 }
 0x3bc   : > { %v1484_v12 = vpop.eup %1483 }
 0x3bd   : > { %v977_v63 = vpack.c.bf16 %v970_v61, %v969_v60  ;;  %v889_v9 = vpop.xlane.xlu1 %888 }
 0x3be   : > { %v938_v0 = vpop.f32.mrf.mxu3  ;;  %1485 = vrcp.f32 %v889_v9 }
 0x3bf   : > { %1417 = vmatmul.msk.bf16.vlgmr.msra.gmra.mxu1 %vm607_vm2, %v977_v63  ;;  %v955_v2 = vmul.f32 %v1480_v1, %v938_v0 }
 0x3c1   : > { %v963_v5 = vadd.f32 %v955_v2, %v1694_v35 }
 0x3c3   : > { %v971_v39 = vmax.f32 %v963_v5, 0.0 }
 0x3c4   : > { %v1486_v14 = vpop.eup %1485 }
 0x3c5   : > { %v892_v17 = vpop.xlane.xlu2 %891 }
 0x3c6   : > { %v940_v4 = vpop.f32.mrf.mxu3  ;;  %1487 = vrcp.f32 %v892_v17 }
 0x3c7   : > { %v956_v42 = vmul.f32 %v1482_v3, %v940_v4 }
 0x3c9   : > { %v964_v7 = vadd.f32 %v956_v42, %v1690_v32 }
 0x3cb   : > { %v972_v8 = vmax.f32 %v964_v7, 0.0 }
 0x3cc   : > { %v1488_v31 = vpop.eup %1487 }
 0x3cd   : > { %v978_v10 = vpack.c.bf16 %v972_v8, %v971_v39  ;;  %v895_v23 = vpop.xlane.xlu0 %894 }
 0x3ce   : > { %v943_v11 = vpop.f32.mrf.mxu3  ;;  %1489 = vrcp.f32 %v895_v23 }
 0x3cf   : > { %1418 = vmatmul.msk.bf16.gmra.mxu1 %vm607_vm2, %v978_v10  ;;  %v957_v13 = vmul.f32 %v1484_v12, %v943_v11 }
 0x3d1   : > { %v965_v16 = vadd.f32 %v957_v13, %v1688_v24 }
 0x3d3   : > { %v973_v32 = vmax.f32 %v965_v16, 0.0 }
 0x3d4   : > { %v1490_v34 = vpop.eup %1489 }
 0x3d6   : > { %v945_v15 = vpop.f32.mrf.mxu3 }
 0x3d7   : > { %v958_v35 = vmul.f32 %v1486_v14, %v945_v15 }
 0x3d9   : > { %v966_v18 = vadd.f32 %v958_v35, %v1684_v22 }
 0x3db   : > { %v974_v19 = vmax.f32 %v966_v18, 0.0 }
 0x3dd   : > { %v979_v29 = vpack.c.bf16 %v974_v19, %v973_v32 }
 0x3de   : > { %v948_v30 = vpop.f32.mrf.mxu3 }
 0x3df   : > { %1419 = vmatmul.msk.bf16.gmra.mxu1 %vm607_vm2, %v979_v29  ;;  %v959_v33 = vmul.f32 %v1488_v31, %v948_v30 }
 0x3e1   : > { %v967_v37 = vadd.f32 %v959_v33, %v1680_v20 }
 0x3e3   : > { %v975_v40 = vmax.f32 %v967_v37, 0.0 }
 0x3e6   : > { %v950_v36 = vpop.f32.mrf.mxu3 }
 0x3e7   : > { %v960_v24 = vmul.f32 %v1490_v34, %v950_v36 }
 0x3e9   : > { %v968_v38 = vadd.f32 %v960_v24, %v1682_v21 }
 0x3eb   : > { %v976_v22 = vmax.f32 %v968_v38, 0.0 }
 0x3ed   : > { %v980_v41 = vpack.c.bf16 %v976_v22, %v975_v40 }
 0x3ef   : > { %1420 = vmatmul.msk.bf16.gmra.mxu1 %vm607_vm2, %v980_v41 }
 0x43c   : > { %v1018_v43 = vpop.f32.mrf.mxu1 }
 0x444   : > { %v1020_v44 = vpop.f32.mrf.mxu1 }
 0x445   : > { %v1038_v21 = vpack.c.bf16 %v1020_v44, %v1018_v43 }
 0x44c   : > { %v1023_v45 = vpop.f32.mrf.mxu1 }
 0x454   : > { %v1025_v46 = vpop.f32.mrf.mxu1 }
 0x455   : > { %v1039_v20 = vpack.c.bf16 %v1025_v46, %v1023_v45 }
 0x45c   : > { %v1028_v47 = vpop.f32.mrf.mxu1 }
 0x464   : > { %v1030_v48 = vpop.f32.mrf.mxu1 }
 0x465   : > { %v1040_v52 = vpack.c.bf16 %v1030_v48, %v1028_v47 }
 0x46c   : > { %v1033_v49 = vpop.f32.mrf.mxu1 }
 0x474   : > { %v1035_v50 = vpop.f32.mrf.mxu1 }
 0x475   : > { %v1041_v51 = vpack.c.bf16 %v1035_v50, %v1033_v49 }
 0x477   : > { %1050 = vmatpush.bf16.msra.mxu0 %v1041_v51 }
 0x47b   : > { %1051 = vmatpush.bf16.msra.mxu0 %v1040_v52 }
 0x47f   : > { %1052 = vmatpush.bf16.msra.mxu0 %v1039_v20 }
 0x483   : > { %1053 = vmatpush.bf16.msra.mxu0 %v1038_v21 }
 0x486   : > { %1421 = vmatmul.msk.bf16.vlgmr.msra.gmra.mxu0 %vm533_vm1, %v1622_v25 }
 0x496   : > { %1422 = vmatmul.msk.bf16.gmra.mxu0 %vm533_vm1, %v1627_v26 }
 0x4a6   : > { %1423 = vmatmul.msk.bf16.gmra.mxu0 %vm533_vm1, %v1632_v27 }
 0x4b6   : > { %1424 = vmatmul.msk.bf16.gmra.mxu0 %vm533_vm1, %v1637_v28 }
 0x503   : > { %v1055_v54 = vpop.f32.mrf.mxu0 }
 0x504   : > { %v1056_v55 = vadd.f32 %v1458_v53, %v1055_v54 }
 0x506   : > { %1075 = vmax.xlane.f32.xlu1 %v1056_v55 }
 0x50b   : > { %v1057_v56 = vpop.f32.mrf.mxu0 }
 0x50c   : > { %v1058_v57 = vadd.f32 %v1458_v53, %v1057_v56 }
 0x50e   : > { %1077 = vmax.xlane.f32.xlu2 %v1058_v57 }
 0x513   : > { %v1060_v25 = vpop.f32.mrf.mxu0 }
 0x514   : > { %v1061_v58 = vadd.f32 %v1458_v53, %v1060_v25 }
 0x516   : > { %1079 = vmax.xlane.f32.xlu0 %v1061_v58 }
 0x51b   : > { %v1062_v26 = vpop.f32.mrf.mxu0 }
 0x51c   : > { %v1063_v59 = vadd.f32 %v1458_v53, %v1062_v26 }
 0x51e   : > { %1081 = vmax.xlane.f32.xlu1 %v1063_v59 }
 0x523   : > { %v1065_v27 = vpop.f32.mrf.mxu0 }
 0x524   : > { %v1066_v60 = vadd.f32 %v1458_v53, %v1065_v27 }
 0x526   : > { %1083 = vmax.xlane.f32.xlu2 %v1066_v60 }
 0x52b   : > { %v1067_v28 = vpop.f32.mrf.mxu0 }
 0x52c   : > { %v1068_v61 = vadd.f32 %v1458_v53, %v1067_v28 }
 0x52e   : > { %1085 = vmax.xlane.f32.xlu0 %v1068_v61 }
 0x533   : > { %v1070_v62 = vpop.f32.mrf.mxu0 }
 0x534   : > { %v1071_v63 = vadd.f32 %v1458_v53, %v1070_v62 }
 0x536   : > { %1087 = vmax.xlane.f32.xlu1 %v1071_v63 }
 0x53b   : > { %v1072_v0 = vpop.f32.mrf.mxu0 }
 0x53c   : > { %v1073_v1 = vadd.f32 %v1458_v53, %v1072_v0 }
 0x53e   : > { %1089 = vmax.xlane.f32.xlu2 %v1073_v1 }
 0x579   : > { %v1076_v2 = vpop.xlane.xlu1 %1075 }
 0x57a   : > { %v1091_v3 = vsub.f32 %v1056_v55, %v1076_v2 }
 0x57c   : > { %v1099_v4 = vmul.f32 1.442695, %v1091_v3 }
 0x57e   : > { %1491 = vpow2.f32 %v1099_v4 }
 0x581   : > { %v1078_v5 = vpop.xlane.xlu2 %1077 }
 0x582   : > { %v1092_v42 = vsub.f32 %v1058_v57, %v1078_v5 }
 0x584   : > { %v1768_v6 = vpop.eup %1491  ;;  %v1101_v7 = vmul.f32 1.442695, %v1092_v42 }
 0x585   : > { %1115 = vadd.xlane.f32.xlu0 %v1768_v6 }
 0x586   : > { %1493 = vpow2.f32 %v1101_v7 }
 0x589   : > { %v1080_v39 = vpop.xlane.xlu0 %1079 }
 0x58a   : > { %v1093_v8 = vsub.f32 %v1061_v58, %v1080_v39 }
 0x58c   : > { %v1771_v9 = vpop.eup %1493  ;;  %v1103_v10 = vmul.f32 1.442695, %v1093_v8 }
 0x58d   : > { %1117 = vadd.xlane.f32.xlu1 %v1771_v9 }
 0x58e   : > { %1495 = vpow2.f32 %v1103_v10 }
 0x591   : > { %v1082_v11 = vpop.xlane.xlu1 %1081 }
 0x592   : > { %v1094_v12 = vsub.f32 %v1063_v59, %v1082_v11 }
 0x594   : > { %v1774_v13 = vpop.eup %1495  ;;  %v1105_v14 = vmul.f32 1.442695, %v1094_v12 }
 0x595   : > { %1119 = vadd.xlane.f32.xlu2 %v1774_v13 }
 0x596   : > { %1497 = vpow2.f32 %v1105_v14 }
 0x599   : > { %v1084_v15 = vpop.xlane.xlu2 %1083 }
 0x59a   : > { %v1095_v16 = vsub.f32 %v1066_v60, %v1084_v15 }
 0x59c   : > { %v1777_v35 = vpop.eup %1497  ;;  %v1107_v17 = vmul.f32 1.442695, %v1095_v16 }
 0x59d   : > { %1121 = vadd.xlane.f32.xlu0 %v1777_v35 }
 0x59e   : > { %1499 = vpow2.f32 %v1107_v17 }
 0x5a1   : > { %v1086_v18 = vpop.xlane.xlu0 %1085 }
 0x5a2   : > { %v1096_v32 = vsub.f32 %v1068_v61, %v1086_v18 }
 0x5a4   : > { %v1780_v19 = vpop.eup %1499  ;;  %v1109_v23 = vmul.f32 1.442695, %v1096_v32 }
 0x5a5   : > { %1123 = vadd.xlane.f32.xlu1 %v1780_v19 }
 0x5a6   : > { %1501 = vpow2.f32 %v1109_v23 }
 0x5a9   : > { %v1088_v29 = vpop.xlane.xlu1 %1087 }
 0x5aa   : > { %v1097_v30 = vsub.f32 %v1071_v63, %v1088_v29 }
 0x5ac   : > { %v1783_v31 = vpop.eup %1501  ;;  %v1111_v33 = vmul.f32 1.442695, %v1097_v30 }
 0x5ad   : > { %1125 = vadd.xlane.f32.xlu2 %v1783_v31 }
 0x5ae   : > { %1503 = vpow2.f32 %v1111_v33 }
 0x5b1   : > { %v1090_v34 = vpop.xlane.xlu2 %1089 }
 0x5b2   : > { %v1098_v36 = vsub.f32 %v1073_v1, %v1090_v34 }
 0x5b4   : > { %v1786_v37 = vpop.eup %1503  ;;  %v1113_v24 = vmul.f32 1.442695, %v1098_v36 }
 0x5b5   : > { %1127 = vadd.xlane.f32.xlu0 %v1786_v37 }
 0x5b6   : > { %1505 = vpow2.f32 %v1113_v24 }
 0x5bc   : > { %v1789_v38 = vpop.eup %1505 }
 0x5bd   : > { %1129 = vadd.xlane.f32.xlu1 %v1789_v38 }
 0x5f8   : > { %v1116_v40 = vpop.xlane.xlu0 %1115 }
 0x5f9   : > { %1507 = vrcp.f32 %v1116_v40  ;;  %v1142_v45 = vand.u32 2147483648, %v1116_v40  ;;  %v1140_v47 = vand.u32 2147483647, %v1116_v40  ;;  %vm1136_vm4 = vweird.f32 %v1116_v40 }
 0x5fb   : > { %v1143_v50 = vor.u32 1.1754944e-38, %v1142_v45  ;;  %vm1141_vm6 = vcmp.eq.f32.partialorder %v1140_v47, 8.507059e+37 }
 0x5ff   : > { %v1508_v22 = vpop.eup %1507 }
 0x600   : > { %v1132_v41 = vmul.f32 %v1508_v22, %v1116_v40  ;;  %v1118_v43 = vpop.xlane.xlu1 %1117  ;;  %vm1137_vm3 = vweird.f32 %v1508_v22 }
 0x601   : > { %1509 = vrcp.f32 %v1118_v43  ;;  %vm1138_vm5 = vmor %vm1136_vm4, %vm1137_vm3  ;;  %v1157_v55 = vand.u32 2147483648, %v1118_v43  ;;  %v1155_v57 = vand.u32 2147483647, %v1118_v43  ;;  %vm1151_vm8 = vweird.f32 %v1118_v43 }
 0x602   : > { %v1133_v44 = vsub.f32 1.0, %v1132_v41 }
 0x603   : > { %v1158_v26 = vor.u32 1.1754944e-38, %v1157_v55  ;;  %vm1156_vm10 = vcmp.eq.f32.partialorder %v1155_v57, 8.507059e+37 }
 0x604   : > { %v1134_v46 = vmul.f32 %v1508_v22, %v1133_v44 }
 0x606   : > { %v1135_v48 = vadd.f32 %v1508_v22, %v1134_v46 }
 0x607   : > { %v1510_v49 = vpop.eup %1509 }
 0x608   : > { %v1139_v51 = vsel %vm1138_vm5, %v1508_v22, %v1135_v48  ;;  %v1147_v52 = vmul.f32 %v1510_v49, %v1118_v43  ;;  %v1120_v20 = vpop.xlane.xlu2 %1119  ;;  %vm1152_vm7 = vweird.f32 %v1510_v49 }
 0x609   : > { %v1144_v21 = vsel %vm1141_vm6, %v1143_v50, %v1139_v51  ;;  %1511 = vrcp.f32 %v1120_v20  ;;  %vm1153_vm9 = vmor %vm1151_vm8, %vm1152_vm7  ;;  %v1172_v63 = vand.u32 2147483648, %v1120_v20  ;;  %v1170_v1 = vand.u32 2147483647, %v1120_v20 }
 0x60a   : > { %v1145_v53 = vmul.f32 %v1768_v6, %v1144_v21  ;;  %v1148_v54 = vsub.f32 1.0, %v1147_v52  ;;  %vm1166_vm12 = vweird.f32 %v1120_v20 }
 0x60b   : > { %v1173_v4 = vor.u32 1.1754944e-38, %v1172_v63  ;;  %vm1171_vm14 = vcmp.eq.f32.partialorder %v1170_v1, 8.507059e+37 }
 0x60c   : > { %1251 = vst [vmem:[%s1797_s13] sm:$0xff] %v1145_v53  ;;  %v1149_v56 = vmul.f32 %v1510_v49, %v1148_v54 }
 0x60e   : > { %v1150_v25 = vadd.f32 %v1510_v49, %v1149_v56 }
 0x60f   : > { %v1512_v58 = vpop.eup %1511 }
 0x610   : > { %v1154_v59 = vsel %vm1153_vm9, %v1510_v49, %v1150_v25  ;;  %v1162_v27 = vmul.f32 %v1512_v58, %v1120_v20  ;;  %v1122_v60 = vpop.xlane.xlu0 %1121  ;;  %vm1167_vm11 = vweird.f32 %v1512_v58 }
 0x611   : > { %v1159_v28 = vsel %vm1156_vm10, %v1158_v26, %v1154_v59  ;;  %1513 = vrcp.f32 %v1122_v60  ;;  %vm1168_vm13 = vmor %vm1166_vm12, %vm1167_vm11  ;;  %v1185_v11 = vand.u32 2147483647, %v1122_v60  ;;  %vm1181_vm0 = vweird.f32 %v1122_v60 }
 0x612   : > { %v1160_v61 = vmul.f32 %v1771_v9, %v1159_v28  ;;  %v1163_v62 = vsub.f32 1.0, %v1162_v27  ;;  %v1187_v9 = vand.u32 2147483648, %v1122_v60 }
 0x613   : > { %vm1186_vm2 = vcmp.eq.f32.partialorder %v1185_v11, 8.507059e+37 }
 0x614   : > { %1252 = vst [vmem:[%s1797_s13 + $0x8] sm:$0xff] %v1160_v61  ;;  %v1164_v0 = vmul.f32 %v1512_v58, %v1163_v62  ;;  %v1188_v15 = vor.u32 1.1754944e-38, %v1187_v9 }
 0x616   : > { %v1165_v2 = vadd.f32 %v1512_v58, %v1164_v0 }
 0x617   : > { %v1514_v3 = vpop.eup %1513 }
 0x618   : > { %v1169_v5 = vsel %vm1168_vm13, %v1512_v58, %v1165_v2  ;;  %v1177_v42 = vmul.f32 %v1514_v3, %v1122_v60  ;;  %v1124_v6 = vpop.xlane.xlu1 %1123  ;;  %vm1182_vm15 = vweird.f32 %v1514_v3 }
 0x619   : > { %v1174_v7 = vsel %vm1171_vm14, %v1173_v4, %v1169_v5  ;;  %1515 = vrcp.f32 %v1124_v6  ;;  %vm1183_vm1 = vmor %vm1181_vm0, %vm1182_vm15  ;;  %v1202_v29 = vand.u32 2147483648, %v1124_v6  ;;  %v1200_v33 = vand.u32 2147483647, %v1124_v6 }
 0x61a   : > { %v1175_v39 = vmul.f32 %v1774_v13, %v1174_v7  ;;  %v1178_v8 = vsub.f32 1.0, %v1177_v42  ;;  %vm1196_vm4 = vweird.f32 %v1124_v6 }
 0x61b   : > { %v1203_v24 = vor.u32 1.1754944e-38, %v1202_v29  ;;  %vm1201_vm6 = vcmp.eq.f32.partialorder %v1200_v33, 8.507059e+37 }
 0x61c   : > { %1253 = vst [vmem:[%s1797_s13 + $0x10] sm:$0xff] %v1175_v39  ;;  %v1179_v10 = vmul.f32 %v1514_v3, %v1178_v8 }
 0x61e   : > { %v1180_v12 = vadd.f32 %v1514_v3, %v1179_v10 }
 0x61f   : > { %v1516_v14 = vpop.eup %1515 }
 0x620   : > { %v1184_v16 = vsel %vm1183_vm1, %v1514_v3, %v1180_v12  ;;  %v1192_v17 = vmul.f32 %v1516_v14, %v1124_v6  ;;  %v1126_v18 = vpop.xlane.xlu2 %1125  ;;  %vm1197_vm3 = vweird.f32 %v1516_v14 }
 0x621   : > { %v1189_v32 = vsel %vm1186_vm2, %v1188_v15, %v1184_v16  ;;  %1517 = vrcp.f32 %v1126_v18  ;;  %vm1198_vm5 = vmor %vm1196_vm4, %vm1197_vm3  ;;  %v1217_v45 = vand.u32 2147483648, %v1126_v18  ;;  %v1215_v47 = vand.u32 2147483647, %v1126_v18 }
 0x622   : > { %v1190_v13 = vmul.f32 %v1777_v35, %v1189_v32  ;;  %v1193_v23 = vsub.f32 1.0, %v1192_v17  ;;  %vm1211_vm8 = vweird.f32 %v1126_v18 }
 0x623   : > { %v1218_v50 = vor.u32 1.1754944e-38, %v1217_v45  ;;  %vm1216_vm10 = vcmp.eq.f32.partialorder %v1215_v47, 8.507059e+37 }
 0x624   : > { %1254 = vst [vmem:[%s1797_s13 + $0x18] sm:$0xff] %v1190_v13  ;;  %v1194_v30 = vmul.f32 %v1516_v14, %v1193_v23 }
 0x626   : > { %v1195_v34 = vadd.f32 %v1516_v14, %v1194_v30 }
 0x627   : > { %v1518_v36 = vpop.eup %1517 }
 0x628   : > { %v1199_v40 = vsel %vm1198_vm5, %v1516_v14, %v1195_v34  ;;  %v1207_v22 = vmul.f32 %v1518_v36, %v1126_v18  ;;  %v1128_v41 = vpop.xlane.xlu0 %1127  ;;  %vm1212_vm7 = vweird.f32 %v1518_v36 }
 0x629   : > { %v1204_v43 = vsel %vm1201_vm6, %v1203_v24, %v1199_v40  ;;  %1519 = vrcp.f32 %v1128_v41  ;;  %vm1213_vm9 = vmor %vm1211_vm8, %vm1212_vm7  ;;  %v1232_v54 = vand.u32 2147483648, %v1128_v41  ;;  %v1230_v56 = vand.u32 2147483647, %v1128_v41 }
 0x62a   : > { %v1205_v35 = vmul.f32 %v1780_v19, %v1204_v43  ;;  %v1208_v44 = vsub.f32 1.0, %v1207_v22  ;;  %vm1226_vm12 = vweird.f32 %v1128_v41 }
 0x62b   : > { %v1233_v58 = vor.u32 1.1754944e-38, %v1232_v54  ;;  %vm1231_vm14 = vcmp.eq.f32.partialorder %v1230_v56, 8.507059e+37 }
 0x62c   : > { %1255 = vst [vmem:[%s1797_s13 + $0x20] sm:$0xff] %v1205_v35  ;;  %v1209_v46 = vmul.f32 %v1518_v36, %v1208_v44 }
 0x62e   : > { %v1210_v48 = vadd.f32 %v1518_v36, %v1209_v46 }
 0x62f   : > { %v1520_v49 = vpop.eup %1519 }
 0x630   : > { %v1214_v51 = vsel %vm1213_vm9, %v1518_v36, %v1210_v48  ;;  %v1222_v52 = vmul.f32 %v1520_v49, %v1128_v41  ;;  %v1130_v20 = vpop.xlane.xlu1 %1129  ;;  %vm1227_vm11 = vweird.f32 %v1520_v49 }
 0x631   : > { %v1219_v21 = vsel %vm1216_vm10, %v1218_v50, %v1214_v51  ;;  %1521 = vrcp.f32 %v1130_v20  ;;  %vm1228_vm13 = vmor %vm1226_vm12, %vm1227_vm11  ;;  %v1247_v28 = vand.u32 2147483648, %v1130_v20  ;;  %v1245_v62 = vand.u32 2147483647, %v1130_v20 }
 0x632   : > { %v1220_v19 = vmul.f32 %v1783_v31, %v1219_v21  ;;  %v1223_v53 = vsub.f32 1.0, %v1222_v52  ;;  %vm1241_vm0 = vweird.f32 %v1130_v20 }
 0x633   : > { %v1248_v0 = vor.u32 1.1754944e-38, %v1247_v28  ;;  %vm1246_vm2 = vcmp.eq.f32.partialorder %v1245_v62, 8.507059e+37 }
 0x634   : > { %1256 = vst [vmem:[%s1797_s13 + $0x28] sm:$0xff] %v1220_v19  ;;  %v1224_v55 = vmul.f32 %v1520_v49, %v1223_v53 }
 0x636   : > { %v1225_v57 = vadd.f32 %v1520_v49, %v1224_v55 }
 0x637   : > { %v1522_v25 = vpop.eup %1521 }
 0x638   : > { %v1229_v26 = vsel %vm1228_vm13, %v1520_v49, %v1225_v57  ;;  %v1237_v59 = vmul.f32 %v1522_v25, %v1130_v20  ;;  %vm1242_vm15 = vweird.f32 %v1522_v25 }
 0x639   : > { %v1234_v27 = vsel %vm1231_vm14, %v1233_v58, %v1229_v26  ;;  %vm1243_vm1 = vmor %vm1241_vm0, %vm1242_vm15 }
 0x63a   : > { %v1235_v60 = vmul.f32 %v1786_v37, %v1234_v27  ;;  %v1238_v31 = vsub.f32 1.0, %v1237_v59 }
 0x63c   : > { %1257 = vst [vmem:[%s1797_s13 + $0x30] sm:$0xff] %v1235_v60  ;;  %v1239_v61 = vmul.f32 %v1522_v25, %v1238_v31 }
 0x63e   : > { %v1240_v63 = vadd.f32 %v1522_v25, %v1239_v61 }
 0x640   : > { %v1244_v1 = vsel %vm1243_vm1, %v1522_v25, %v1240_v63 }
 0x641   : > { %v1249_v2 = vsel %vm1246_vm2, %v1248_v0, %v1244_v1 }
 0x642   : > { %v1250_v3 = vmul.f32 %v1789_v38, %v1249_v2 }
 0x644   : > { %1258 = vst [vmem:[%s1797_s13 + $0x38] sm:$0xff] %v1250_v3 }
 0x645 PF: > { %s22_s21 = sadd.s32 1, %s1529_s21  }
 0x646   : > { %p19_p4 = scmp.ge.s32.totalorder %s22_s21, 4  }
 0x648   :  { %21 = sbr.rel (!%p19_p4) target bundleno = 1 (0x1), region = 101 }

</bundles_post_ra>
